<compile_context>
chip_gen: v6e
topology: v6e:2x2x1
jax: 0.10.0
libtpu: 0.0.40
codegen_flags: <defaults>
</compile_context>

<pallas_src>
import math

import jax
import jax.numpy as jnp
from jax.experimental import pallas as pl
from jax.experimental.pallas import tpu as pltpu

LANE = 128
_MIB = 1024 * 1024


def _round_up(x, m):
    return ((x + m - 1) // m) * m


def _pad2d(a, rows, cols):
    return jnp.pad(a, ((0, rows - a.shape[0]), (0, cols - a.shape[1])))


def _vmem_limit_bytes():
    """~half of physical VMEM: 64 MiB on v5e/v6e (128 MiB), 32 MiB on v7x (64 MiB)."""
    try:
        cap = int(pltpu.get_tpu_info().vmem_capacity_bytes)
    except Exception:
        cap = 64 * _MIB
    return int(min(96 * _MIB, max(32 * _MIB, cap // 2)))


# ---------------------------------------------------------------------------
# Kernel 1: feature transform XW = X @ W  (hoisted out of the A_hat loop)
# ---------------------------------------------------------------------------
def _feature_transform_kernel(x_ref, w_ref, out_ref):
    out_ref[...] = jnp.dot(x_ref[...], w_ref[...],
                           preferred_element_type=jnp.float32
                           ).astype(out_ref.dtype)


def feature_transform(x, w, *, out_dtype, tile_m):
    n, cin = x.shape
    cout = w.shape[1]
    return pl.pallas_call(
        _feature_transform_kernel,
        out_shape=jax.ShapeDtypeStruct((n, cout), out_dtype),
        grid=(n // tile_m,),
        in_specs=[pl.BlockSpec((tile_m, cin), lambda i: (i, 0)),
                  pl.BlockSpec((cin, cout), lambda i: (0, 0))],
        out_specs=pl.BlockSpec((tile_m, cout), lambda i: (i, 0)),
        compiler_params=pltpu.CompilerParams(
            dimension_semantics=("parallel",),
            vmem_limit_bytes=_vmem_limit_bytes()),
    )(x, w)


# ---------------------------------------------------------------------------
# Kernel 2: tiled propagation with fused epilogue
#   out[i] = relu( sum_k A[i,k] @ F[k] + b ) @ W_post
# fetch_idx (1D, scalar-prefetched) both (a) remaps masked K blocks to the
# previously fetched block so the pipeline dedups the DMA, and (b) gates the
# accumulate (fetch == k  <=>  block nonzero, modulo a harmless zero block at
# k == 0 whose contribution is exactly zero).
# ---------------------------------------------------------------------------
def propagate(adj, feat, bias, w_post, fetch_idx, *, out_dtype,
              tile_m, tile_k, feat_resident):
    n = adj.shape[0]
    f = feat.shape[1]
    fo = w_post.shape[1]
    n_i, n_k = n // tile_m, n // tile_k

    def kernel(fetch_ref, adj_ref, feat_ref, bias_ref, wpost_ref,
               out_ref, acc_ref):
        i = pl.program_id(0)
        k = pl.program_id(1)

        @pl.when(k == 0)
        def _():
            acc_ref[...] = jnp.zeros_like(acc_ref)

        @pl.when(fetch_ref[i * n_k + k] == k)      # nonzero A_hat block
        def _():
            if feat_resident:
                off = pl.multiple_of(k * tile_k, tile_k)
                f_tile = feat_ref[pl.ds(off, tile_k), :]
            else:
                f_tile = feat_ref[...]
            acc_ref[...] += jnp.dot(adj_ref[...], f_tile,
                                    preferred_element_type=jnp.float32)

        @pl.when(k == pl.num_programs(1) - 1)
        def _():
            h = jnp.maximum(acc_ref[...] + bias_ref[...], 0.0)   # f32 epilogue
            out_ref[...] = jnp.dot(h.astype(wpost_ref.dtype), wpost_ref[...],
                                   preferred_element_type=jnp.float32
                                   ).astype(out_ref.dtype)

    if feat_resident:
        feat_spec = pl.BlockSpec((n, f), lambda i, k, fetch: (0, 0))
    else:
        feat_spec = pl.BlockSpec(
            (tile_k, f), lambda i, k, fetch: (fetch[i * n_k + k], 0))

    grid_spec = pltpu.PrefetchScalarGridSpec(
        num_scalar_prefetch=1,
        grid=(n_i, n_k),
        in_specs=[
            # A tile: masked blocks remap to the previous fetch -> DMA dedup.
            pl.BlockSpec((tile_m, tile_k),
                         lambda i, k, fetch: (i, fetch[i * n_k + k])),
            feat_spec,
            pl.BlockSpec((1, f), lambda i, k, fetch: (0, 0)),      # bias
            pl.BlockSpec((f, fo), lambda i, k, fetch: (0, 0)),     # W_post
        ],
        out_specs=pl.BlockSpec((tile_m, fo), lambda i, k, fetch: (i, 0)),
        scratch_shapes=[pltpu.VMEM((tile_m, f), jnp.float32)],
    )
    cost = pl.CostEstimate(
        flops=2 * n * n * f + 2 * n * f * fo,
        transcendentals=0,
        bytes_accessed=int(adj.size * adj.dtype.itemsize
                           + feat.size * feat.dtype.itemsize
                           + n * fo * jnp.dtype(out_dtype).itemsize),
    )
    return pl.pallas_call(
        kernel,
        out_shape=jax.ShapeDtypeStruct((n, fo), out_dtype),
        grid_spec=grid_spec,
        compiler_params=pltpu.CompilerParams(
            dimension_semantics=("parallel", "arbitrary"),
            vmem_limit_bytes=_vmem_limit_bytes()),
        cost_estimate=cost,
    )(fetch_idx, adj, feat, bias, w_post)


# ---------------------------------------------------------------------------
# Kernel 3: global_mean_pool + Linear bias:  out = pool @ y2 + b_lin
# (the Linear weight was already applied in the layer-2 propagation epilogue)
# Tiled over N (reduction axis) with a small f32 accumulator.
# ---------------------------------------------------------------------------
def pool_linear(pool, feat, bias, *, tile_k):
    b, n = pool.shape
    fo = feat.shape[1]
    n_k = n // tile_k

    def kernel(pool_ref, feat_ref, bias_ref, out_ref, acc_ref):
        k = pl.program_id(0)

        @pl.when(k == 0)
        def _():
            acc_ref[...] = jnp.zeros_like(acc_ref)

        acc_ref[...] += jnp.dot(pool_ref[...], feat_ref[...],
                                preferred_element_type=jnp.float32)

        @pl.when(k == pl.num_programs(0) - 1)
        def _():
            out_ref[...] = (acc_ref[...] + bias_ref[...]).astype(out_ref.dtype)

    return pl.pallas_call(
        kernel,
        out_shape=jax.ShapeDtypeStruct((b, fo), jnp.float32),
        grid=(n_k,),
        in_specs=[pl.BlockSpec((b, tile_k), lambda k: (0, k)),
                  pl.BlockSpec((tile_k, fo), lambda k: (k, 0)),
                  pl.BlockSpec((1, fo), lambda k: (0, 0))],
        out_specs=pl.BlockSpec((b, fo), lambda k: (0, 0)),
        scratch_shapes=[pltpu.VMEM((b, fo), jnp.float32)],
        compiler_params=pltpu.CompilerParams(
            dimension_semantics=("arbitrary",),
            vmem_limit_bytes=_vmem_limit_bytes()),
    )(pool, feat, bias)


# ---------------------------------------------------------------------------
# Forward wrapper: padding, bf16 casts, fetch-index build, 4 pallas_calls
# ---------------------------------------------------------------------------
def gcn2_forward(adj_hat, x, w1, b1, w2, b2, pool, w_lin, b_lin, *,
                 tile_m=256, tile_k=512, feat_resident_bytes=8 * _MIB):
    n, cin = x.shape
    h1 = w1.shape[1]
    h2 = w2.shape[1]
    ncls = w_lin.shape[1]
    nb = pool.shape[0]

    bf = jnp.bfloat16

    # Tile / padding selection (tiles clamped for small N; N padded so both
    # tile sizes divide it exactly).
    n_lane = _round_up(n, LANE)
    tile_m = min(tile_m, n_lane)
    tile_k = min(tile_k, n_lane)
    step = tile_m * tile_k // math.gcd(tile_m, tile_k)
    n_p = _round_up(n_lane, step)
    n_i, n_k = n_p // tile_m, n_p // tile_k

    cin_p = _round_up(max(cin, LANE), LANE)
    h1_p = _round_up(max(h1, LANE), LANE)
    h2_p = _round_up(max(h2, LANE), LANE)
    ncls_p = _round_up(max(ncls, LANE), LANE)
    nb_p = _round_up(max(nb, 8), 8)

    # Keep the feature panel fully VMEM-resident if it comfortably fits
    # (double-buffer estimate) — removes the per-row-tile re-stream entirely.
    feat_resident = (2 * n_p * h1_p * 2) <= feat_resident_bytes

    adj_p = _pad2d(adj_hat.astype(jnp.float32), n_p, n_p)

    # fetch[i, k] = largest k' <= k with a nonzero (i, k') block of A_hat
    # (0 if none).  Flattened to 1D to avoid 2D SMEM padding.
    nz = (jnp.abs(adj_p).reshape(n_i, tile_m, n_k, tile_k)
          .sum(axis=(1, 3)) > 0)
    ks = jnp.arange(n_k, dtype=jnp.int32)[None, :]
    fetch_idx = jnp.maximum(
        jax.lax.cummax(jnp.where(nz, ks, -1), axis=1), 0
    ).astype(jnp.int32).reshape(-1)

    adj_b = adj_p.astype(bf)

    x_p = _pad2d(x, n_p, cin_p).astype(bf)
    w1_p = _pad2d(w1, cin_p, h1_p).astype(bf)
    b1_p = _pad2d(b1.reshape(1, -1), 1, h1_p).astype(jnp.float32)
    w2_p = _pad2d(w2, h1_p, h2_p).astype(bf)
    b2_p = _pad2d(b2.reshape(1, -1), 1, h2_p).astype(jnp.float32)
    wl_p = _pad2d(w_lin, h2_p, ncls_p).astype(bf)
    bl_p = _pad2d(b_lin.reshape(1, -1), 1, ncls_p).astype(jnp.float32)
    pool_p = _pad2d(pool, nb_p, n_p).astype(bf)

    # Layer 1 feature transform (hoisted out of the A_hat-tiled loop).
    xw1 = feature_transform(x_p, w1_p, out_dtype=bf, tile_m=tile_k)
    # Layer 1 propagation; epilogue fuses bias + ReLU + next layer's @W2.
    xw2 = propagate(adj_b, xw1, b1_p, w2_p, fetch_idx, out_dtype=bf,
                    tile_m=tile_m, tile_k=tile_k, feat_resident=feat_resident)
    # Layer 2 propagation; epilogue fuses bias + ReLU + final Linear weight.
    y2 = propagate(adj_b, xw2, b2_p, wl_p, fetch_idx, out_dtype=bf,
                   tile_m=tile_m, tile_k=tile_k, feat_resident=feat_resident)
    # global_mean_pool + Linear bias (tiled over N, f32 accumulation).
    out = pool_linear(pool_p, y2, bl_p, tile_k=tile_k)
    return out[:nb, :ncls]


# ---------------------------------------------------------------------------
# Plain-JAX glue: dense normalized adjacency + mean-pool matrix
# ---------------------------------------------------------------------------
def build_normalized_adjacency(edge_index, num_nodes):
    """Dense A_hat = D^{-1/2}(A + I)D^{-1/2}, matching PyG GCNConv gcn_norm."""
    src, dst = edge_index[0], edge_index[1]
    A = jnp.zeros((num_nodes, num_nodes), jnp.float32)
    A = A.at[dst, src].add(1.0)                 # A[target, source] = 1
    A = A + jnp.eye(num_nodes, dtype=jnp.float32)
    deg = A.sum(axis=1)
    dinv = jnp.where(deg > 0, 1.0 / jnp.sqrt(deg), 0.0)
    return dinv[:, None] * A * dinv[None, :]


def build_mean_pool(batch, num_graphs):
    """pool[b, n] = 1/|{n : batch[n]==b}| if batch[n]==b else 0."""
    one_hot = (batch[None, :] == jnp.arange(num_graphs)[:, None]).astype(jnp.float32)
    counts = jnp.maximum(one_hot.sum(axis=1, keepdims=True), 1.0)
    return one_hot / counts


if __name__ == "__main__":
    key = jax.random.PRNGKey(0)

    # Small synthetic problem: 2 graphs x 128 nodes, 3-D positions as features.
    N = 256
    B = 2
    input_ch = 3
    hidden1, hidden2 = 16, 32
    num_classes = 4

    k_x, k_w1, k_b1, k_w2, k_b2, k_wl, k_bl = jax.random.split(key, 7)

    x = jax.random.normal(k_x, (N, input_ch), jnp.float32)

    # Deterministic edge_index: a ring within each graph (both directions)
    src_list, dst_list = [], []
    n_per = N // B
    for g in range(B):
        base = g * n_per
        for i in range(n_per):
            a = base + i
            c = base + (i + 1) % n_per
            src_list += [a, c]
            dst_list += [c, a]
    edge_index = jnp.array([src_list, dst_list], dtype=jnp.int32)
    batch = jnp.repeat(jnp.arange(B, dtype=jnp.int32), n_per)

    def init_w(k, shape):
        return (jax.random.normal(k, shape, jnp.float32)
                / jnp.sqrt(shape[0])).astype(jnp.float32)

    w1 = init_w(k_w1, (input_ch, hidden1))
    b1 = 0.01 * jax.random.normal(k_b1, (1, hidden1), jnp.float32)
    w2 = init_w(k_w2, (hidden1, hidden2))
    b2 = 0.01 * jax.random.normal(k_b2, (1, hidden2), jnp.float32)
    w_lin = init_w(k_wl, (hidden2, num_classes))
    b_lin = 0.01 * jax.random.normal(k_bl, (1, num_classes), jnp.float32)

    adj_hat = build_normalized_adjacency(edge_index, N)
    pool = build_mean_pool(batch, B)

    # Path 1: default (large tiles, feat panel resident in VMEM).
    out = gcn2_forward(adj_hat, x, w1, b1, w2, b2, pool, w_lin, b_lin)
    out = jax.block_until_ready(out)
    assert out.shape == (B, num_classes)

    # Path 2: streamed feat panels + multi-block grid (exercises the DMA-dedup
    # zero-block skip on the block-diagonal adjacency).
    out2 = gcn2_forward(adj_hat, x, w1, b1, w2, b2, pool, w_lin, b_lin,
                        tile_m=128, tile_k=128, feat_resident_bytes=0)
    out2 = jax.block_until_ready(out2)
    assert out2.shape == (B, num_classes)

    # Reference 1: matched precision (bf16 operands, f32 accumulation).
    bf = jnp.bfloat16
    hp = jax.lax.Precision.HIGHEST
    xw1_m = jnp.dot(x.astype(bf), w1.astype(bf),
                    preferred_element_type=jnp.float32).astype(bf)
    h1_m = jnp.maximum(jnp.dot(adj_hat.astype(bf), xw1_m,
                               preferred_element_type=jnp.float32) + b1, 0.0)
    xw2_m = jnp.dot(h1_m.astype(bf), w2.astype(bf),
                    preferred_element_type=jnp.float32).astype(bf)
    h2_m = jnp.maximum(jnp.dot(adj_hat.astype(bf), xw2_m,
                               preferred_element_type=jnp.float32) + b2, 0.0)
    y2_m = jnp.dot(h2_m.astype(bf), w_lin.astype(bf),
                   preferred_element_type=jnp.float32).astype(bf)
    ref_m = jnp.dot(pool.astype(bf), y2_m,
                    preferred_element_type=jnp.float32) + b_lin
    assert jnp.allclose(out, ref_m, atol=5e-3, rtol=5e-3), \
        "mismatch vs matched-precision reference (resident path)"
    assert jnp.allclose(out2, ref_m, atol=5e-3, rtol=5e-3), \
        "mismatch vs matched-precision reference (streamed path)"

    # Reference 2: full f32 (original module semantics), loose tol for bf16.
    h1_f = jnp.maximum(jnp.dot(adj_hat, jnp.dot(x, w1, precision=hp),
                               precision=hp) + b1, 0.0)
    h2_f = jnp.maximum(jnp.dot(adj_hat, jnp.dot(h1_f, w2, precision=hp),
                               precision=hp) + b2, 0.0)
    ref_f = (jnp.dot(jnp.dot(pool, h2_f, precision=hp), w_lin, precision=hp)
             + b_lin)
    assert jnp.allclose(out, ref_f, atol=5e-2, rtol=5e-2), \
        "mismatch vs f32 reference"

    print("KERNEL_OK")
</pallas_src>

<mosaic_0001>
module attributes {stable_mosaic.version = 11 : i64} {
  func.func @_feature_transform_kernel(%arg0: i32, %arg1: memref<256x128xbf16, #tpu.memory_space<vmem>>, %arg2: memref<128x128xbf16, #tpu.memory_space<vmem>>, %arg3: memref<256x128xbf16, #tpu.memory_space<vmem>>) attributes {dimension_semantics = [#tpu.dimension_semantics<parallel>], iteration_bounds = array<i64: 1>, scalar_prefetch = 0 : i64, scratch_operands = 0 : i64, tpu.core_type = #tpu.core_type<tc>, window_params = [{transform_indices = @transform_0, window_bounds = array<i64: 256, 128>}, {pipeline_mode = #tpu.pipeline_mode<synchronous>, transform_indices = @transform_1, window_bounds = array<i64: 128, 128>}, {transform_indices = @transform_2, window_bounds = array<i64: 256, 128>}]} {
    %c0 = arith.constant 0 : index
    %c0_0 = arith.constant 0 : index
    %0 = vector.load %arg1[%c0, %c0_0] : memref<256x128xbf16, #tpu.memory_space<vmem>>, vector<256x128xbf16>
    %c0_1 = arith.constant 0 : index
    %c0_2 = arith.constant 0 : index
    %1 = vector.load %arg2[%c0_1, %c0_2] : memref<128x128xbf16, #tpu.memory_space<vmem>>, vector<128x128xbf16>
    %cst = arith.constant dense<0.000000e+00> : vector<256x128xf32>
    %2 = tpu.matmul %0, %1, %cst {dimension_numbers = #tpu.dot_dimension_numbers<[1], [0], [0], [1], [0, 0, 1, 1], [], []>} : vector<256x128xbf16>, vector<128x128xbf16>, vector<256x128xf32> -> vector<256x128xf32>
    %3 = arith.truncf %2 : vector<256x128xf32> to vector<256x128xbf16>
    %c0_3 = arith.constant 0 : index
    %c0_4 = arith.constant 0 : index
    %4 = vector.load %arg3[%c0_3, %c0_4] : memref<256x128xbf16, #tpu.memory_space<vmem>>, vector<256x128xbf16>
    tpu.vector_store %arg3[%c0_3, %c0_4], %3 {strides = array<i32>} : memref<256x128xbf16, #tpu.memory_space<vmem>>, vector<256x128xbf16>,
    return
  }
  func.func @transform_0(%arg0: i32) -> (i32, i32) {
    %c0_i32 = arith.constant 0 : i32
    %c0_i32_0 = arith.constant 0 : i32
    return %arg0, %c0_i32 : i32, i32
  }
  func.func @transform_1(%arg0: i32) -> (i32, i32) {
    %c0_i32 = arith.constant 0 : i32
    %c0_i32_0 = arith.constant 0 : i32
    %c0_i32_1 = arith.constant 0 : i32
    return %c0_i32, %c0_i32_0 : i32, i32
  }
  func.func @transform_2(%arg0: i32) -> (i32, i32) {
    %c0_i32 = arith.constant 0 : i32
    %c0_i32_0 = arith.constant 0 : i32
    return %arg0, %c0_i32 : i32, i32
  }
}

</mosaic_0001>

<bundles_post_ra>
// kernel: tpu_custom_call.1
= control target key start
LH: loop header
LB: loop body
LE: loop exit
PB: predicated region body
PF: predicated region fallthrough
CT: control target
= control target key end

     0   :  { %7 = vsyncpa [#allocation3], 0  ;;  %s976_s0 = inlined_call_operand.hbm [shape: bf16[256,128], index: 0, kind: input, shape index: {}]   ;;  %s977_s1 = inlined_call_operand.hbm [shape: bf16[128,128], index: 1, kind: input, shape index: {}]   ;;  %s978_s2 = inlined_call_operand.hbm [shape: bf16[256,128], index: 2, kind: output, shape index: {}]  }
   0x1   :  { %8 = vsyncpa [#allocation6], 0 }
   0x2   :  { %9 = vsyncpa [#allocation4], 0  ;;  %s938_s9 = smov [#allocation2]  }
   0x3   :  { %s15_s10 = sshll.u32 %s938_s9, 4  ;;  %s16_s10 = int_to_ptr.vmem [resolvable:$true] %s15_s10 }
   0x4   :  { %s880_s11 = scalar_lea.vmem %s16_s10, 2048  ;;  %p885_p1 = scmp.lt.s32.totalorder %s16_s10, %s16_s10 }
   0x5   :  { %p881_p0 = scmp.ne.s32.totalorder %s16_s10, %s880_s11  ;;  %p886_p2 = scmp.lt.s32.totalorder %s880_s11, %s880_s11 }
   0x7   :  { %p887_p3 = por %p886_p2, %p885_p1 }
   0x9   :  { %p888_p4 = pnand %p887_p3, %p881_p0 }
   0xb   :  { %891 = shalt.err (!%p888_p4)
}
   0xc   :  { %s939_s12 = smov 64   ;;  %s940_s13 = smov 4  }
   0xd   :  { %21 = dma.hbm_to_vmem [thread:$0]  %s976_s0, 2048, %s16_s10, [#allocation3], %s939_s12, %s939_s12, %s940_s13  }
   0xe   :  { %s941_s16 = smov [#allocation5]  }
   0xf   :  { %s27_s17 = sshll.u32 %s941_s16, 4  ;;  %s28_s17 = int_to_ptr.vmem [resolvable:$true] %s27_s17 }
  0x10   :  { %s900_s18 = scalar_lea.vmem %s28_s17, 1024  ;;  %p905_p6 = scmp.lt.s32.totalorder %s28_s17, %s28_s17 }
  0x11   :  { %p901_p5 = scmp.ne.s32.totalorder %s28_s17, %s900_s18  ;;  %p906_p7 = scmp.lt.s32.totalorder %s900_s18, %s900_s18 }
  0x13   :  { %p907_p8 = por %p906_p7, %p905_p6 }
  0x15   :  { %p908_p9 = pnand %p907_p8, %p901_p5 }
  0x17   :  { %911 = shalt.err (!%p908_p9)
}
  0x18   :  { %33 = dma.hbm_to_vmem [thread:$0]  %s977_s1, 1024, %s28_s17, [#allocation6], %s939_s12, %s939_s12, %s940_s13  }
  0x19   :  { %932 = dma.done.wait [#allocation3], 2048  }
  0x1a   :  { %933 = vsyncadd [#allocation3], 4294965248 }
  0x1b   :  { %934 = dma.done.wait [#allocation6], 1024  }
  0x1c   :  { %935 = vsyncadd [#allocation6], 4294966272  ;;  %v848_v0 = vld [vmem:[#allocation5 + $0x38] sm:$0xff]   ;;  %v849_v1 = vld [vmem:[#allocation5 + $0x30] sm:$0xff]   ;;  %s942_s0 = smov [#allocation7]  }
  0x1d   :  { %779 = vmatprep.subr.bf16.mxu0 %v848_v0  ;;  %827 = vmatprep.subr.bf16.mxu1 %v848_v0  ;;  %v850_v2 = vld [vmem:[#allocation5 + $0x28] sm:$0xff]   ;;  %v851_v3 = vld [vmem:[#allocation5 + $0x20] sm:$0xff]   ;;  %v852_v6 = vld [vmem:[#allocation5 + $0x18] sm:$0xff]   ;;  %s559_s1 = sshll.u32 %s942_s0, 4  ;;  %s560_s1 = int_to_ptr.vmem [resolvable:$true] %s559_s1 }
  0x1e   :  { %780 = vmatpush3.bf16.msra.mxu0 %v848_v0  ;;  %835 = vmatpush3.bf16.msra.mxu1 %v848_v0  ;;  %v856_v4 = vld [vmem:[#allocation2] sm:$0xff]   ;;  %v853_v7 = vld [vmem:[#allocation5 + $0x10] sm:$0xff]   ;;  %v854_v8 = vld [vmem:[#allocation5 + $0x8] sm:$0xff]   ;;  %s912_s21 = scalar_lea.vmem %s560_s1, 2048  ;;  %p917_p11 = scmp.lt.s32.totalorder %s560_s1, %s560_s1 }
  0x1f   :  { %781 = vmatprep.subr.bf16.mxu0 %v849_v1  ;;  %828 = vmatprep.subr.bf16.mxu1 %v849_v1  ;;  %v857_v5 = vld [vmem:[#allocation2 + $0x40] sm:$0xff]   ;;  %v858_v10 = vld [vmem:[#allocation2 + $0x8] sm:$0xff]   ;;  %v860_v12 = vld [vmem:[#allocation2 + $0x10] sm:$0xff]   ;;  %p913_p10 = scmp.ne.s32.totalorder %s560_s1, %s912_s21  ;;  %p918_p12 = scmp.lt.s32.totalorder %s912_s21, %s912_s21 }
  0x20   :  { %795 = vmatprep.mubr.bf16.mxu0 %v856_v4  ;;  %811 = vmatprep.mubr.bf16.mxu1 %v857_v5  ;;  %v855_v9 = vld [vmem:[#allocation5] sm:$0xff]   ;;  %v859_v11 = vld [vmem:[#allocation2 + $0x48] sm:$0xff]   ;;  %v861_v13 = vld [vmem:[#allocation2 + $0x50] sm:$0xff]  }
  0x21   :  { %v862_v14 = vld [vmem:[#allocation2 + $0x18] sm:$0xff]   ;;  %v864_v16 = vld [vmem:[#allocation2 + $0x20] sm:$0xff]   ;;  %v866_v18 = vld [vmem:[#allocation2 + $0x28] sm:$0xff]   ;;  %p919_p13 = por %p918_p12, %p917_p11 }
  0x22   :  { %782 = vmatpush3.bf16.msra.mxu0 %v849_v1  ;;  %836 = vmatpush3.bf16.msra.mxu1 %v849_v1  ;;  %v863_v15 = vld [vmem:[#allocation2 + $0x58] sm:$0xff]   ;;  %v865_v17 = vld [vmem:[#allocation2 + $0x60] sm:$0xff]   ;;  %v867_v19 = vld [vmem:[#allocation2 + $0x68] sm:$0xff]  }
  0x23   :  { %783 = vmatprep.subr.bf16.mxu0 %v850_v2  ;;  %829 = vmatprep.subr.bf16.mxu1 %v850_v2  ;;  %v868_v20 = vld [vmem:[#allocation2 + $0x30] sm:$0xff]   ;;  %v870_v22 = vld [vmem:[#allocation2 + $0x38] sm:$0xff]   ;;  %p920_p0 = pnand %p919_p13, %p913_p10 }
  0x24   :  { %v869_v21 = vld [vmem:[#allocation2 + $0x70] sm:$0xff]   ;;  %v871_v23 = vld [vmem:[#allocation2 + $0x78] sm:$0xff]  }
  0x26   :  { %784 = vmatpush3.bf16.msra.mxu0 %v850_v2  ;;  %837 = vmatpush3.bf16.msra.mxu1 %v850_v2 }
  0x27   :  { %785 = vmatprep.subr.bf16.mxu0 %v851_v3  ;;  %830 = vmatprep.subr.bf16.mxu1 %v851_v3 }
  0x2a   :  { %786 = vmatpush3.bf16.msra.mxu0 %v851_v3  ;;  %838 = vmatpush3.bf16.msra.mxu1 %v851_v3 }
  0x2b   :  { %787 = vmatprep.subr.bf16.mxu0 %v852_v6  ;;  %831 = vmatprep.subr.bf16.mxu1 %v852_v6 }
  0x2e   :  { %788 = vmatpush3.bf16.msra.mxu0 %v852_v6  ;;  %839 = vmatpush3.bf16.msra.mxu1 %v852_v6 }
  0x2f   :  { %789 = vmatprep.subr.bf16.mxu0 %v853_v7  ;;  %832 = vmatprep.subr.bf16.mxu1 %v853_v7 }
  0x32   :  { %790 = vmatpush3.bf16.msra.mxu0 %v853_v7  ;;  %840 = vmatpush3.bf16.msra.mxu1 %v853_v7 }
  0x33   :  { %791 = vmatprep.subr.bf16.mxu0 %v854_v8  ;;  %833 = vmatprep.subr.bf16.mxu1 %v854_v8 }
  0x36   :  { %792 = vmatpush3.bf16.msra.mxu0 %v854_v8  ;;  %841 = vmatpush3.bf16.msra.mxu1 %v854_v8 }
  0x37   :  { %793 = vmatprep.subr.bf16.mxu0 %v855_v9  ;;  %834 = vmatprep.subr.bf16.mxu1 %v855_v9 }
  0x3a   :  { %794 = vmatpush3.bf16.msra.mxu0 %v855_v9  ;;  %842 = vmatpush3.bf16.msra.mxu1 %v855_v9 }
  0x3d   :  { %796 = vmatmul.mubr.bf16.vlgmr.msra.gmra.mxu0 %v858_v10  ;;  %812 = vmatmul.mubr.bf16.vlgmr.msra.gmra.mxu1 %v859_v11 }
  0x3e   :  { %799 = vmatprep.mubr.bf16.mxu0 %v860_v12  ;;  %815 = vmatprep.mubr.bf16.mxu1 %v861_v13 }
  0x45   :  { %800 = vmatmul.mubr.bf16.gmra.mxu0 %v862_v14  ;;  %816 = vmatmul.mubr.bf16.gmra.mxu1 %v863_v15 }
  0x46   :  { %803 = vmatprep.mubr.bf16.mxu0 %v864_v16  ;;  %819 = vmatprep.mubr.bf16.mxu1 %v865_v17 }
  0x4d   :  { %804 = vmatmul.mubr.bf16.gmra.mxu0 %v866_v18  ;;  %820 = vmatmul.mubr.bf16.gmra.mxu1 %v867_v19 }
  0x4e   :  { %807 = vmatprep.mubr.bf16.mxu0 %v868_v20  ;;  %823 = vmatprep.mubr.bf16.mxu1 %v869_v21 }
  0x55   :  { %808 = vmatmul.mubr.bf16.gmra.mxu0 %v870_v22  ;;  %824 = vmatmul.mubr.bf16.gmra.mxu1 %v871_v23 }
  0xfd   :  { %v797_v24 = vpop.f32.mrf.mxu0  ;;  %v813_v25 = vpop.f32.mrf.mxu1 }
  0xff   :  { %v267_v26 = vpop.f32.mrf.mxu0  ;;  %v331_v27 = vpop.f32.mrf.mxu1 }
 0x101   :  { %v798_v28 = vpop.f32.mrf.mxu0  ;;  %v814_v29 = vpop.f32.mrf.mxu1 }
 0x102   :  { %v668_v30 = vpack.c.bf16 %v798_v28, %v797_v24  ;;  %v708_v31 = vpack.c.bf16 %v814_v29, %v813_v25 }
 0x103   :  { %v270_v32 = vpop.f32.mrf.mxu0  ;;  %v334_v33 = vpop.f32.mrf.mxu1 }
 0x104   :  { %740 = vst [vmem:[#allocation7 + $0x8] sm:$0xff] %v668_v30   ;;  %748 = vst [vmem:[#allocation7 + $0x48] sm:$0xff] %v708_v31   ;;  %v663_v34 = vpack.c.bf16 %v270_v32, %v267_v26  ;;  %v703_v35 = vpack.c.bf16 %v334_v33, %v331_v27 }
 0x105   :  { %v801_v36 = vpop.f32.mrf.mxu0  ;;  %v817_v37 = vpop.f32.mrf.mxu1 }
 0x106   :  { %664 = vst [vmem:[#allocation7] sm:$0xff] %v663_v34   ;;  %747 = vst [vmem:[#allocation7 + $0x40] sm:$0xff] %v703_v35  }
 0x107   :  { %v283_v38 = vpop.f32.mrf.mxu0  ;;  %v347_v39 = vpop.f32.mrf.mxu1 }
 0x109   :  { %v802_v40 = vpop.f32.mrf.mxu0  ;;  %v818_v41 = vpop.f32.mrf.mxu1 }
 0x10a   :  { %v678_v42 = vpack.c.bf16 %v802_v40, %v801_v36  ;;  %v718_v43 = vpack.c.bf16 %v818_v41, %v817_v37 }
 0x10b   :  { %v286_v44 = vpop.f32.mrf.mxu0  ;;  %v350_v45 = vpop.f32.mrf.mxu1 }
 0x10c   :  { %742 = vst [vmem:[#allocation7 + $0x18] sm:$0xff] %v678_v42   ;;  %750 = vst [vmem:[#allocation7 + $0x58] sm:$0xff] %v718_v43   ;;  %v673_v46 = vpack.c.bf16 %v286_v44, %v283_v38  ;;  %v713_v47 = vpack.c.bf16 %v350_v45, %v347_v39 }
 0x10d   :  { %v805_v48 = vpop.f32.mrf.mxu0  ;;  %v821_v49 = vpop.f32.mrf.mxu1 }
 0x10e   :  { %741 = vst [vmem:[#allocation7 + $0x10] sm:$0xff] %v673_v46   ;;  %749 = vst [vmem:[#allocation7 + $0x50] sm:$0xff] %v713_v47  }
 0x10f   :  { %v299_v50 = vpop.f32.mrf.mxu0  ;;  %v363_v51 = vpop.f32.mrf.mxu1 }
 0x111   :  { %v806_v52 = vpop.f32.mrf.mxu0  ;;  %v822_v53 = vpop.f32.mrf.mxu1 }
 0x112   :  { %v688_v54 = vpack.c.bf16 %v806_v52, %v805_v48  ;;  %v728_v55 = vpack.c.bf16 %v822_v53, %v821_v49 }
 0x113   :  { %v302_v56 = vpop.f32.mrf.mxu0  ;;  %v366_v57 = vpop.f32.mrf.mxu1 }
 0x114   :  { %744 = vst [vmem:[#allocation7 + $0x28] sm:$0xff] %v688_v54   ;;  %752 = vst [vmem:[#allocation7 + $0x68] sm:$0xff] %v728_v55   ;;  %v683_v58 = vpack.c.bf16 %v302_v56, %v299_v50  ;;  %v723_v59 = vpack.c.bf16 %v366_v57, %v363_v51 }
 0x115   :  { %v809_v60 = vpop.f32.mrf.mxu0  ;;  %v825_v61 = vpop.f32.mrf.mxu1 }
 0x116   :  { %743 = vst [vmem:[#allocation7 + $0x20] sm:$0xff] %v683_v58   ;;  %751 = vst [vmem:[#allocation7 + $0x60] sm:$0xff] %v723_v59  }
 0x117   :  { %v315_v62 = vpop.f32.mrf.mxu0  ;;  %v379_v63 = vpop.f32.mrf.mxu1 }
 0x119   :  { %v810_v0 = vpop.f32.mrf.mxu0  ;;  %v826_v1 = vpop.f32.mrf.mxu1 }
 0x11a   :  { %v698_v2 = vpack.c.bf16 %v810_v0, %v809_v60  ;;  %v738_v3 = vpack.c.bf16 %v826_v1, %v825_v61 }
 0x11b   :  { %v318_v4 = vpop.f32.mrf.mxu0  ;;  %v382_v5 = vpop.f32.mrf.mxu1 }
 0x11c   :  { %746 = vst [vmem:[#allocation7 + $0x38] sm:$0xff] %v698_v2   ;;  %754 = vst [vmem:[#allocation7 + $0x78] sm:$0xff] %v738_v3   ;;  %v693_v6 = vpack.c.bf16 %v318_v4, %v315_v62  ;;  %v733_v7 = vpack.c.bf16 %v382_v5, %v379_v63 }
 0x11e   :  { %745 = vst [vmem:[#allocation7 + $0x30] sm:$0xff] %v693_v6   ;;  %753 = vst [vmem:[#allocation7 + $0x70] sm:$0xff] %v733_v7  }
 0x11f   :  { %923 = shalt.err (!%p920_p0)
}
 0x120   :  { %565 = dma.vmem_to_hbm [thread:$0]  %s560_s1, 2048, %s978_s2, [#allocation4], %s939_s12, %s939_s12, %s940_s13  }
 0x121   :  { %936 = dma.done.wait [#allocation4], 2048  }
 0x122   :  { %937 = vsyncadd [#allocation4], 4294965248 }
 0x123   :  { %569 = vsyncpa [#allocation3], 1 }
 0x124   :  { %570 = vsyncpa [#allocation6], 1 }
 0x125   :  { %571 = vsyncpa [#allocation4], 1 }

</bundles_post_ra>
